<compile_context>
chip_gen: v7x
topology: tpu7x:2x2x1
jax: 0.10.0
libtpu: 0.0.40
codegen_flags: <defaults>
</compile_context>

<pallas_src>
import jax
import jax.numpy as jnp
from jax import lax
from jax.experimental import pallas as pl
from jax.experimental.pallas import tpu as pltpu

# ----------------------------- problem sizes --------------------------------
B = 2                         # batch
S = 8                         # text sequence length
IMG_C, IMG_H, IMG_W = 3, 16, 16
IMG_FLAT = IMG_C * IMG_H * IMG_W           # 768
VD = 48                       # vision encoder feature dim (timm num_features stand-in)
TD = 40                       # text encoder hidden size (HF hidden_size stand-in)
H = 32                        # config.hidden_dim
NH = 8                        # num_heads (CrossModalAttention default)
HD = H // NH                  # head dim
H2 = H // 2                   # classifier hidden dim
NC = 5                        # config.num_classes
VOCAB = 64
LN_EPS = 1e-5                 # nn.LayerNorm default
SCALE = 1.0 / float(HD) ** 0.5

# ------------------ packed, lane-dense output slab layout -------------------
OUT_W = 128
OFF_FEAT = 0                  # pooled features      [0, 32)
OFF_LOGITS = OFF_FEAT + H     # logits               [32, 37)
OFF_UMEAN = OFF_LOGITS + NC   # uncertainty mean     [37, 38)
OFF_UVAR = OFF_UMEAN + 1      # uncertainty variance [38, 39)
OFF_ATTN = OFF_UVAR + 1       # attention weights    [39, 47)
PACKED = OFF_ATTN + S
PAD = OUT_W - PACKED

# ------------------ packed, lane-dense weight slab layout -------------------
def _ceil8(x):
    return (x + 7) // 8 * 8

SLAB_W = 128
R_VQ = 0                        # (IMG_FLAT, 2H)  composed vision->[v_proj | q]
R_TKV = IMG_FLAT                # (TD, 2H)        composed text->[k | v]
R_WO = _ceil8(R_TKV + TD)       # (H, H)          attention out_proj
R_CU = R_WO + H                 # (H, H2+2)       [classifier L1 | mean | var]
R_W2 = R_CU + H                 # (H2, NC)        classifier L2
R_GEXP = _ceil8(R_W2 + H2)      # (NH, H)         head-group expand mask
R_GSUM = R_GEXP + NH            # (H, NH)         head-group sum mask
R_BIAS = R_GSUM + H             # 7 bias rows
ROW_BVQ = R_BIAS + 0            # (2H,)
ROW_BTKV = R_BIAS + 1           # (2H,)
ROW_BO = R_BIAS + 2             # (H,)
ROW_LNW = R_BIAS + 3            # (H,)
ROW_LNB = R_BIAS + 4            # (H,)
ROW_BCU = R_BIAS + 5            # (H2+2,)
ROW_B2 = R_BIAS + 6             # (NC,)
R_TOTAL = _ceil8(R_BIAS + 7)    # 936 rows -> (936, 128) f32 slab (~479 KB)


def _softplus(x):
    # F.softplus with threshold=20 (linear above the threshold)
    return jnp.where(x > 20.0, x, jnp.log(1.0 + jnp.exp(jnp.minimum(x, 20.0))))


# ------------------------------- kernel -------------------------------------
def _fused_kernel(img_ref, text_ref, w_ref, out_ref):
    f32 = jnp.float32

    def w(r0, nr, c0, nc):
        # static sub-slab view of the packed weight slab
        return w_ref[r0:r0 + nr, c0:c0 + nc]

    # --- composed vision chain: one matmul yields [v_proj | q] -------------
    # TODO(synk): pretrained timm vision encoder replaced by flatten+linear
    # stub; its weight is composed with the projector/Q weights on the host.
    vq = (jnp.dot(img_ref[...], w(R_VQ, IMG_FLAT, 0, 2 * H),
                  preferred_element_type=f32)
          + w(ROW_BVQ, 1, 0, 2 * H))                                      # (B, 2H)
    v_proj = vq[:, :H]
    q = vq[:, H:]

    # --- composed text chain: one matmul yields [k | v] for all B*S rows ---
    kv = (jnp.dot(text_ref[...], w(R_TKV, TD, 0, 2 * H),
                  preferred_element_type=f32)
          + w(ROW_BTKV, 1, 0, 2 * H))                                     # (B*S, 2H)
    k = kv[:, :H]
    v = kv[:, H:]

    # --- all-head attention via precomputed head-group matrices ------------
    g_sum = w(R_GSUM, H, 0, NH)   # (H, NH): feature d belongs to head h
    g_exp = w(R_GEXP, NH, 0, H)   # (NH, H): broadcast head weight to its dims

    k3 = k.reshape(B, S, H)
    v3 = v.reshape(B, S, H)
    prod = q[:, None, :] * k3                                             # (B, S, H)
    scores = (jnp.dot(prod.reshape(B * S, H), g_sum, preferred_element_type=f32)
              .reshape(B, S, NH)) * SCALE                                 # (B, S, NH)

    m = jnp.max(scores, axis=1, keepdims=True)                            # (B, 1, NH)
    e = jnp.exp(scores - m)                                               # (B, S, NH)
    denom = jnp.sum(e, axis=1, keepdims=True)                             # (B, 1, NH)
    attn = e * pl.reciprocal(denom, approx=True)                          # (B, S, NH)

    a_exp = jnp.dot(attn.reshape(B * S, NH), g_exp, preferred_element_type=f32)
    ctx = jnp.sum((a_exp * v3.reshape(B * S, H)).reshape(B, S, H), axis=1)  # (B, H)
    attended = (jnp.dot(ctx, w(R_WO, H, 0, H), preferred_element_type=f32)
                + w(ROW_BO, 1, 0, H))                                     # (B, H)

    # --- residual + LayerNorm (mean-pool over Lq=1 is identity) ------------
    x = v_proj + attended
    mu = jnp.mean(x, axis=-1, keepdims=True)
    var = jnp.mean((x - mu) ** 2, axis=-1, keepdims=True)
    pooled = ((x - mu) * lax.rsqrt(var + LN_EPS) * w(ROW_LNW, 1, 0, H)
              + w(ROW_LNB, 1, 0, H))                                      # (B, H)

    # --- fused classifier layer-1 + uncertainty heads (shared LHS) ---------
    hu = (jnp.dot(pooled, w(R_CU, H, 0, H2 + 2), preferred_element_type=f32)
          + w(ROW_BCU, 1, 0, H2 + 2))                                     # (B, H2+2)
    h1 = jnp.maximum(hu[:, :H2], 0.0)                                     # ReLU (Dropout == id in eval)
    umean = hu[:, H2:H2 + 1]
    uvar = _softplus(hu[:, H2 + 1:H2 + 2]) + 1e-6
    logits = (jnp.dot(h1, w(R_W2, H2, 0, NC), preferred_element_type=f32)
              + w(ROW_B2, 1, 0, NC))                                      # (B, NC)

    # --- head-averaged attention weights (nn.MultiheadAttention default) ---
    attn_avg = jnp.mean(attn, axis=2)                                     # (B, S)

    # --- single lane-dense packed store -------------------------------------
    pad = jnp.zeros((B, PAD), jnp.float32)
    out_ref[...] = jnp.concatenate([pooled, logits, umean, uvar, attn_avg, pad],
                                   axis=-1)                               # (B, 128)


# ------------------------------ parameters ----------------------------------
def init_params(key):
    ks = jax.random.split(key, 24)

    def w(k, shape, scale=0.05):
        return jax.random.normal(k, shape, jnp.float32) * scale

    return {
        # encoder stubs
        'w_venc': w(ks[0], (IMG_FLAT, VD)),
        'emb':    w(ks[1], (VOCAB, TD), 0.1),
        # vision / text projectors
        'wvp': w(ks[2], (VD, H)),  'bvp': w(ks[3], (1, H)),
        'wtp': w(ks[4], (TD, H)),  'btp': w(ks[5], (1, H)),
        # MultiheadAttention in_proj (q/k/v) + out_proj
        'wq': w(ks[6], (H, H)),   'bq': w(ks[7], (1, H)),
        'wk': w(ks[8], (H, H)),   'bk': w(ks[9], (1, H)),
        'wv': w(ks[10], (H, H)),  'bv': w(ks[11], (1, H)),
        'wo': w(ks[12], (H, H)),  'bo': w(ks[13], (1, H)),
        # LayerNorm
        'lnw': jnp.ones((1, H), jnp.float32), 'lnb': jnp.zeros((1, H), jnp.float32),
        # classifier
        'w1': w(ks[14], (H, H2)), 'b1': w(ks[15], (1, H2)),
        'w2': w(ks[16], (H2, NC)), 'b2': w(ks[17], (1, NC)),
        # uncertainty head
        'wm':  w(ks[18], (H, 1)), 'bm':  w(ks[19], (1, 1)),
        'wvr': w(ks[20], (H, 1)), 'bvr': w(ks[21], (1, 1)),
    }


def pack_weights(params):
    """Compose adjacent linears and pack everything into one (R_TOTAL, 128) slab.

    Called ONCE at init time (outside jit) — the per-call kernel then needs
    only a single weight DMA.
    """
    f32 = jnp.float32

    # fused K/V in-proj
    w_kv = jnp.concatenate([params['wk'], params['wv']], axis=1)          # (H, 2H)
    b_kv = jnp.concatenate([params['bk'], params['bv']], axis=1)          # (1, 2H)

    # vision stub @ projector (@ Wq)  ->  [v_proj | q]
    w_v = params['w_venc'] @ params['wvp']                                # (768, H)
    w_q = w_v @ params['wq']                                              # (768, H)
    w_vq = jnp.concatenate([w_v, w_q], axis=1)                            # (768, 2H)
    b_vq = jnp.concatenate(
        [params['bvp'], params['bvp'] @ params['wq'] + params['bq']], axis=1)  # (1, 2H)

    # text projector @ fused K/V  ->  [k | v]
    w_tkv = params['wtp'] @ w_kv                                          # (TD, 2H)
    b_tkv = params['btp'] @ w_kv + b_kv                                   # (1, 2H)

    # classifier layer-1 + uncertainty heads (shared LHS)
    w_cu = jnp.concatenate([params['w1'], params['wm'], params['wvr']], axis=1)  # (H, H2+2)
    b_cu = jnp.concatenate([params['b1'], params['bm'], params['bvr']], axis=1)  # (1, H2+2)

    # head-group masks (precomputed; no iota/compare in the kernel)
    g_sum = jnp.kron(jnp.eye(NH, dtype=f32), jnp.ones((HD, 1), f32))      # (H, NH)
    g_exp = g_sum.T                                                       # (NH, H)

    slab = jnp.zeros((R_TOTAL, SLAB_W), f32)
    slab = slab.at[R_VQ:R_VQ + IMG_FLAT, 0:2 * H].set(w_vq)
    slab = slab.at[R_TKV:R_TKV + TD, 0:2 * H].set(w_tkv)
    slab = slab.at[R_WO:R_WO + H, 0:H].set(params['wo'])
    slab = slab.at[R_CU:R_CU + H, 0:H2 + 2].set(w_cu)
    slab = slab.at[R_W2:R_W2 + H2, 0:NC].set(params['w2'])
    slab = slab.at[R_GEXP:R_GEXP + NH, 0:H].set(g_exp)
    slab = slab.at[R_GSUM:R_GSUM + H, 0:NH].set(g_sum)
    slab = slab.at[ROW_BVQ, 0:2 * H].set(b_vq[0])
    slab = slab.at[ROW_BTKV, 0:2 * H].set(b_tkv[0])
    slab = slab.at[ROW_BO, 0:H].set(params['bo'][0])
    slab = slab.at[ROW_LNW, 0:H].set(params['lnw'][0])
    slab = slab.at[ROW_LNB, 0:H].set(params['lnb'][0])
    slab = slab.at[ROW_BCU, 0:H2 + 2].set(b_cu[0])
    slab = slab.at[ROW_B2, 0:NC].set(params['b2'][0])
    return slab


# ------------------------------- wrapper -------------------------------------
@jax.jit
def medical_multimodal_forward(images, input_ids, attention_mask, emb, w_slab):
    # TODO(synk): pretrained HuggingFace text encoder has no Pallas equivalent;
    # replaced with a deterministic embedding-lookup stub producing (B, S, TD).
    text_feat = emb[input_ids] * attention_mask[..., None].astype(jnp.float32)
    text_flat = text_feat.reshape(B * S, TD)
    img_flat = images.reshape(B, IMG_FLAT).astype(jnp.float32)

    vmem = pltpu.MemorySpace.VMEM
    slab = pl.pallas_call(
        _fused_kernel,
        out_shape=jax.ShapeDtypeStruct((B, OUT_W), jnp.float32),
        in_specs=[pl.BlockSpec(memory_space=vmem)] * 3,
        out_specs=pl.BlockSpec(memory_space=vmem),
        cost_estimate=pl.CostEstimate(
            flops=320_000, transcendentals=200, bytes_accessed=520_000),
    )(img_flat, text_flat, w_slab)

    feats = slab[:, OFF_FEAT:OFF_FEAT + H]
    logits = slab[:, OFF_LOGITS:OFF_LOGITS + NC]
    umean = slab[:, OFF_UMEAN:OFF_UMEAN + 1]
    uvar = slab[:, OFF_UVAR:OFF_UVAR + 1]
    attn = slab[:, OFF_ATTN:OFF_ATTN + S]

    return {
        'logits': logits,
        'uncertainty_mean': umean,
        'uncertainty_var': uvar,
        'features': feats,
        'attention_weights': attn.reshape(B, 1, S),   # matches PyTorch (B, Lq=1, S)
    }


# --------------------------------- main --------------------------------------
if __name__ == "__main__":
    key = jax.random.PRNGKey(0)
    k_param, k_img, k_ids = jax.random.split(key, 3)

    params = init_params(k_param)
    w_slab = pack_weights(params)                 # once, outside jit
    w_slab = jax.block_until_ready(w_slab)

    images = jax.random.normal(k_img, (B, IMG_C, IMG_H, IMG_W), jnp.float32)  # NCHW
    input_ids = jax.random.randint(k_ids, (B, S), 0, VOCAB, jnp.int32)
    attention_mask = jnp.ones((B, S), jnp.int32).at[:, -2:].set(0)

    outputs = medical_multimodal_forward(images, input_ids, attention_mask,
                                         params['emb'], w_slab)
    jax.block_until_ready(outputs)

    assert outputs['logits'].shape == (B, NC)
    assert outputs['uncertainty_mean'].shape == (B, 1)
    assert outputs['uncertainty_var'].shape == (B, 1)
    assert outputs['features'].shape == (B, H)
    assert outputs['attention_weights'].shape == (B, 1, S)
    assert bool(jnp.all(outputs['uncertainty_var'] > 0.0))
    # attention weights are a softmax over S averaged over heads -> rows sum to ~1
    assert bool(jnp.all(jnp.abs(outputs['attention_weights'].sum(-1) - 1.0) < 1e-2))
    print("KERNEL_OK")
</pallas_src>

<mosaic_0001>
module attributes {stable_mosaic.version = 11 : i64} {
  func.func @_fused_kernel(%arg0: memref<2x768xf32, #tpu.memory_space<vmem>>, %arg1: memref<16x40xf32, #tpu.memory_space<vmem>>, %arg2: memref<936x128xf32, #tpu.memory_space<vmem>>, %arg3: memref<2x128xf32, #tpu.memory_space<vmem>>) attributes {dimension_semantics = [], scalar_prefetch = 0 : i64, scratch_operands = 0 : i64, tpu.core_type = #tpu.core_type<tc>} {
    %c0 = arith.constant 0 : index
    %c0_0 = arith.constant 0 : index
    %0 = vector.load %arg0[%c0, %c0_0] : memref<2x768xf32, #tpu.memory_space<vmem>>, vector<2x768xf32>
    %c0_1 = arith.constant 0 : index
    %c0_2 = arith.constant 0 : index
    %1 = vector.load %arg2[%c0_1, %c0_2] : memref<936x128xf32, #tpu.memory_space<vmem>>, vector<768x64xf32>
    %cst = arith.constant dense<0.000000e+00> : vector<2x64xf32>
    %2 = tpu.matmul %0, %1, %cst {dimension_numbers = #tpu.dot_dimension_numbers<[1], [0], [0], [1], [0, 0, 1, 1], [], []>} : vector<2x768xf32>, vector<768x64xf32>, vector<2x64xf32> -> vector<2x64xf32>
    %c928 = arith.constant 928 : index
    %c0_3 = arith.constant 0 : index
    %3 = vector.load %arg2[%c928, %c0_3] : memref<936x128xf32, #tpu.memory_space<vmem>>, vector<1x64xf32>
    %4 = vector.broadcast %3 : vector<1x64xf32> to vector<2x64xf32>
    %5 = arith.addf %2, %4 : vector<2x64xf32>
    %6 = vector.extract_strided_slice %5 {offsets = [0, 0], sizes = [2, 32], strides = [1, 1]} : vector<2x64xf32> to vector<2x32xf32>
    %7 = vector.extract_strided_slice %5 {offsets = [0, 32], sizes = [2, 32], strides = [1, 1]} : vector<2x64xf32> to vector<2x32xf32>
    %c0_4 = arith.constant 0 : index
    %c0_5 = arith.constant 0 : index
    %8 = vector.load %arg1[%c0_4, %c0_5] : memref<16x40xf32, #tpu.memory_space<vmem>>, vector<16x40xf32>
    %c768 = arith.constant 768 : index
    %c0_6 = arith.constant 0 : index
    %9 = vector.load %arg2[%c768, %c0_6] : memref<936x128xf32, #tpu.memory_space<vmem>>, vector<40x64xf32>
    %cst_7 = arith.constant dense<0.000000e+00> : vector<16x64xf32>
    %10 = tpu.matmul %8, %9, %cst_7 {dimension_numbers = #tpu.dot_dimension_numbers<[1], [0], [0], [1], [0, 0, 1, 1], [], []>} : vector<16x40xf32>, vector<40x64xf32>, vector<16x64xf32> -> vector<16x64xf32>
    %c929 = arith.constant 929 : index
    %c0_8 = arith.constant 0 : index
    %11 = vector.load %arg2[%c929, %c0_8] : memref<936x128xf32, #tpu.memory_space<vmem>>, vector<1x64xf32>
    %12 = vector.broadcast %11 : vector<1x64xf32> to vector<16x64xf32>
    %13 = arith.addf %10, %12 : vector<16x64xf32>
    %14 = vector.extract_strided_slice %13 {offsets = [0, 0], sizes = [16, 32], strides = [1, 1]} : vector<16x64xf32> to vector<16x32xf32>
    %15 = vector.extract_strided_slice %13 {offsets = [0, 32], sizes = [16, 32], strides = [1, 1]} : vector<16x64xf32> to vector<16x32xf32>
    %c896 = arith.constant 896 : index
    %c0_9 = arith.constant 0 : index
    %16 = vector.load %arg2[%c896, %c0_9] : memref<936x128xf32, #tpu.memory_space<vmem>>, vector<32x8xf32>
    %c888 = arith.constant 888 : index
    %c0_10 = arith.constant 0 : index
    %17 = vector.load %arg2[%c888, %c0_10] : memref<936x128xf32, #tpu.memory_space<vmem>>, vector<8x32xf32>
    %18 = vector.shape_cast %14 : vector<16x32xf32> to vector<2x8x32xf32>
    %19 = vector.shape_cast %15 : vector<16x32xf32> to vector<2x8x32xf32>
    %20 = vector.shape_cast %7 : vector<2x32xf32> to vector<2x1x32xf32>
    %21 = vector.broadcast %20 : vector<2x1x32xf32> to vector<2x8x32xf32>
    %22 = arith.mulf %21, %18 : vector<2x8x32xf32>
    %23 = vector.shape_cast %22 : vector<2x8x32xf32> to vector<16x32xf32>
    %cst_11 = arith.constant dense<0.000000e+00> : vector<16x8xf32>
    %24 = tpu.matmul %23, %16, %cst_11 {dimension_numbers = #tpu.dot_dimension_numbers<[1], [0], [0], [1], [0, 0, 1, 1], [], []>} : vector<16x32xf32>, vector<32x8xf32>, vector<16x8xf32> -> vector<16x8xf32>
    %25 = vector.shape_cast %24 : vector<16x8xf32> to vector<2x8x8xf32>
    %cst_12 = arith.constant 5.000000e-01 : f32
    %26 = vector.broadcast %cst_12 : f32 to vector<2x8x8xf32>
    %27 = arith.mulf %25, %26 : vector<2x8x8xf32>
    %cst_13 = arith.constant dense<0xFF800000> : vector<2x8xf32>
    %28 = vector.multi_reduction <maximumf>, %27, %cst_13 [1] : vector<2x8x8xf32> to vector<2x8xf32>
    %29 = vector.shape_cast %28 : vector<2x8xf32> to vector<2x1x8xf32>
    %30 = vector.broadcast %29 : vector<2x1x8xf32> to vector<2x8x8xf32>
    %31 = arith.subf %27, %30 : vector<2x8x8xf32>
    %32 = math.exp %31 : vector<2x8x8xf32>
    %cst_14 = arith.constant dense<0.000000e+00> : vector<2x8xf32>
    %33 = vector.multi_reduction <add>, %32, %cst_14 [1] : vector<2x8x8xf32> to vector<2x8xf32>
    %34 = vector.shape_cast %33 : vector<2x8xf32> to vector<2x1x8xf32>
    %35 = tpu.reciprocal %34 {approx = true} : vector<2x1x8xf32> -> vector<2x1x8xf32>
    %36 = vector.broadcast %35 : vector<2x1x8xf32> to vector<2x8x8xf32>
    %37 = arith.mulf %32, %36 : vector<2x8x8xf32>
    %38 = vector.shape_cast %37 : vector<2x8x8xf32> to vector<16x8xf32>
    %cst_15 = arith.constant dense<0.000000e+00> : vector<16x32xf32>
    %39 = tpu.matmul %38, %17, %cst_15 {dimension_numbers = #tpu.dot_dimension_numbers<[1], [0], [0], [1], [0, 0, 1, 1], [], []>} : vector<16x8xf32>, vector<8x32xf32>, vector<16x32xf32> -> vector<16x32xf32>
    %40 = vector.shape_cast %19 : vector<2x8x32xf32> to vector<16x32xf32>
    %41 = arith.mulf %39, %40 : vector<16x32xf32>
    %42 = vector.shape_cast %41 : vector<16x32xf32> to vector<2x8x32xf32>
    %cst_16 = arith.constant dense<0.000000e+00> : vector<2x32xf32>
    %43 = vector.multi_reduction <add>, %42, %cst_16 [1] : vector<2x8x32xf32> to vector<2x32xf32>
    %c808 = arith.constant 808 : index
    %c0_17 = arith.constant 0 : index
    %44 = vector.load %arg2[%c808, %c0_17] : memref<936x128xf32, #tpu.memory_space<vmem>>, vector<32x32xf32>
    %cst_18 = arith.constant dense<0.000000e+00> : vector<2x32xf32>
    %45 = tpu.matmul %43, %44, %cst_18 {dimension_numbers = #tpu.dot_dimension_numbers<[1], [0], [0], [1], [0, 0, 1, 1], [], []>} : vector<2x32xf32>, vector<32x32xf32>, vector<2x32xf32> -> vector<2x32xf32>
    %c930 = arith.constant 930 : index
    %c0_19 = arith.constant 0 : index
    %46 = vector.load %arg2[%c930, %c0_19] : memref<936x128xf32, #tpu.memory_space<vmem>>, vector<1x32xf32>
    %47 = vector.broadcast %46 : vector<1x32xf32> to vector<2x32xf32>
    %48 = arith.addf %45, %47 : vector<2x32xf32>
    %49 = arith.addf %6, %48 : vector<2x32xf32>
    %cst_20 = arith.constant dense<0.000000e+00> : vector<2xf32>
    %50 = vector.multi_reduction <add>, %49, %cst_20 [1] : vector<2x32xf32> to vector<2xf32>
    %51 = vector.shape_cast %50 : vector<2xf32> to vector<2x1xf32>
    %cst_21 = arith.constant 3.200000e+01 : f32
    %52 = vector.broadcast %cst_21 : f32 to vector<2x1xf32>
    %53 = arith.divf %51, %52 : vector<2x1xf32>
    %54 = vector.broadcast %53 : vector<2x1xf32> to vector<2x32xf32>
    %55 = arith.subf %49, %54 : vector<2x32xf32>
    %56 = arith.mulf %55, %55 : vector<2x32xf32>
    %cst_22 = arith.constant dense<0.000000e+00> : vector<2xf32>
    %57 = vector.multi_reduction <add>, %56, %cst_22 [1] : vector<2x32xf32> to vector<2xf32>
    %58 = vector.shape_cast %57 : vector<2xf32> to vector<2x1xf32>
    %cst_23 = arith.constant 3.200000e+01 : f32
    %59 = vector.broadcast %cst_23 : f32 to vector<2x1xf32>
    %60 = arith.divf %58, %59 : vector<2x1xf32>
    %61 = vector.broadcast %53 : vector<2x1xf32> to vector<2x32xf32>
    %62 = arith.subf %49, %61 : vector<2x32xf32>
    %cst_24 = arith.constant 9.99999974E-6 : f32
    %63 = vector.broadcast %cst_24 : f32 to vector<2x1xf32>
    %64 = arith.addf %60, %63 : vector<2x1xf32>
    %65 = math.rsqrt %64 : vector<2x1xf32>
    %66 = vector.broadcast %65 : vector<2x1xf32> to vector<2x32xf32>
    %67 = arith.mulf %62, %66 : vector<2x32xf32>
    %c931 = arith.constant 931 : index
    %c0_25 = arith.constant 0 : index
    %68 = vector.load %arg2[%c931, %c0_25] : memref<936x128xf32, #tpu.memory_space<vmem>>, vector<1x32xf32>
    %69 = vector.broadcast %68 : vector<1x32xf32> to vector<2x32xf32>
    %70 = arith.mulf %67, %69 : vector<2x32xf32>
    %c932 = arith.constant 932 : index
    %c0_26 = arith.constant 0 : index
    %71 = vector.load %arg2[%c932, %c0_26] : memref<936x128xf32, #tpu.memory_space<vmem>>, vector<1x32xf32>
    %72 = vector.broadcast %71 : vector<1x32xf32> to vector<2x32xf32>
    %73 = arith.addf %70, %72 : vector<2x32xf32>
    %c840 = arith.constant 840 : index
    %c0_27 = arith.constant 0 : index
    %74 = vector.load %arg2[%c840, %c0_27] : memref<936x128xf32, #tpu.memory_space<vmem>>, vector<32x18xf32>
    %cst_28 = arith.constant dense<0.000000e+00> : vector<2x18xf32>
    %75 = tpu.matmul %73, %74, %cst_28 {dimension_numbers = #tpu.dot_dimension_numbers<[1], [0], [0], [1], [0, 0, 1, 1], [], []>} : vector<2x32xf32>, vector<32x18xf32>, vector<2x18xf32> -> vector<2x18xf32>
    %c933 = arith.constant 933 : index
    %c0_29 = arith.constant 0 : index
    %76 = vector.load %arg2[%c933, %c0_29] : memref<936x128xf32, #tpu.memory_space<vmem>>, vector<1x18xf32>
    %77 = vector.broadcast %76 : vector<1x18xf32> to vector<2x18xf32>
    %78 = arith.addf %75, %77 : vector<2x18xf32>
    %79 = vector.extract_strided_slice %78 {offsets = [0, 0], sizes = [2, 16], strides = [1, 1]} : vector<2x18xf32> to vector<2x16xf32>
    %cst_30 = arith.constant 0.000000e+00 : f32
    %80 = vector.broadcast %cst_30 : f32 to vector<2x16xf32>
    %81 = arith.maximumf %79, %80 : vector<2x16xf32>
    %82 = vector.extract_strided_slice %78 {offsets = [0, 16], sizes = [2, 1], strides = [1, 1]} : vector<2x18xf32> to vector<2x1xf32>
    %83 = vector.extract_strided_slice %78 {offsets = [0, 17], sizes = [2, 1], strides = [1, 1]} : vector<2x18xf32> to vector<2x1xf32>
    %cst_31 = arith.constant 2.000000e+01 : f32
    %84 = vector.broadcast %cst_31 : f32 to vector<2x1xf32>
    %85 = arith.cmpf ogt, %83, %84 : vector<2x1xf32>
    %cst_32 = arith.constant 2.000000e+01 : f32
    %86 = vector.broadcast %cst_32 : f32 to vector<2x1xf32>
    %87 = arith.minimumf %83, %86 : vector<2x1xf32>
    %88 = math.exp %87 : vector<2x1xf32>
    %cst_33 = arith.constant 1.000000e+00 : f32
    %89 = vector.broadcast %cst_33 : f32 to vector<2x1xf32>
    %90 = arith.addf %89, %88 : vector<2x1xf32>
    %91 = math.log %90 : vector<2x1xf32>
    %92 = arith.select %85, %83, %91 : vector<2x1xi1>, vector<2x1xf32>
    %cst_34 = arith.constant 9.99999997E-7 : f32
    %93 = vector.broadcast %cst_34 : f32 to vector<2x1xf32>
    %94 = arith.addf %92, %93 : vector<2x1xf32>
    %c872 = arith.constant 872 : index
    %c0_35 = arith.constant 0 : index
    %95 = vector.load %arg2[%c872, %c0_35] : memref<936x128xf32, #tpu.memory_space<vmem>>, vector<16x5xf32>
    %cst_36 = arith.constant dense<0.000000e+00> : vector<2x5xf32>
    %96 = tpu.matmul %81, %95, %cst_36 {dimension_numbers = #tpu.dot_dimension_numbers<[1], [0], [0], [1], [0, 0, 1, 1], [], []>} : vector<2x16xf32>, vector<16x5xf32>, vector<2x5xf32> -> vector<2x5xf32>
    %c934 = arith.constant 934 : index
    %c0_37 = arith.constant 0 : index
    %97 = vector.load %arg2[%c934, %c0_37] : memref<936x128xf32, #tpu.memory_space<vmem>>, vector<1x5xf32>
    %98 = vector.broadcast %97 : vector<1x5xf32> to vector<2x5xf32>
    %99 = arith.addf %96, %98 : vector<2x5xf32>
    %cst_38 = arith.constant dense<0.000000e+00> : vector<2x8xf32>
    %100 = vector.multi_reduction <add>, %37, %cst_38 [2] : vector<2x8x8xf32> to vector<2x8xf32>
    %cst_39 = arith.constant 8.000000e+00 : f32
    %101 = vector.broadcast %cst_39 : f32 to vector<2x8xf32>
    %102 = arith.divf %100, %101 : vector<2x8xf32>
    %cst_40 = arith.constant 0.000000e+00 : f32
    %103 = vector.broadcast %cst_40 : f32 to vector<2x81xf32>
    %104 = tpu.concatenate %73, %99, %82, %94, %102, %103 in 1 : vector<2x32xf32>, vector<2x5xf32>, vector<2x1xf32>, vector<2x1xf32>, vector<2x8xf32>, vector<2x81xf32> -> vector<2x128xf32>
    %c0_41 = arith.constant 0 : index
    %c0_42 = arith.constant 0 : index
    %105 = vector.load %arg3[%c0_41, %c0_42] : memref<2x128xf32, #tpu.memory_space<vmem>>, vector<2x128xf32>
    tpu.vector_store %arg3[%c0_41, %c0_42], %104 {strides = array<i32>} : memref<2x128xf32, #tpu.memory_space<vmem>>, vector<2x128xf32>,
    return
  }
}

</mosaic_0001>

<bundles_post_ra>
// kernel: medical_multimodal_forward.1
= control target key start
LH: loop header
LB: loop body
LE: loop exit
PB: predicated region body
PF: predicated region fallthrough
CT: control target
= control target key end

     0   :  { %8 = vsyncpa [#allocation3], 0  ;;  %s1469_s12 = smov [#allocation2]   ;;  %s1569_s0 = inlined_call_operand.vmem [shape: f32[2,768], index: 0, kind: input, shape index: {}]   ;;  %s1570_s1 = inlined_call_operand.vmem [shape: f32[16,40], index: 1, kind: input, shape index: {}]   ;;  %s1571_s2 = inlined_call_operand.hbm [shape: f32[936,128], index: 2, kind: input, shape index: {}]   ;;  %s1572_s3 = inlined_call_operand.vmem [shape: f32[2,128], index: 3, kind: output, shape index: {}]  }
   0x1   :  { %s18_s13 = sshll.u32 %s1469_s12, 4  ;;  %s1445_s16 = scalar_lea.hbm %s1571_s2, 14976  ;;  %s19_s13 = int_to_ptr.vmem [resolvable:$true] %s18_s13 }
   0x2   :  { %p1446_p0 = scmp.ne.s32.totalorder %s1571_s2, %s1445_s16  ;;  %p1449_p1 = scmp.lt.u32.totalorder %s1445_s16, %s1571_s2 }
   0x4   :  { %p1451_p2 = pnand %p1449_p1, %p1446_p0 }
   0x6   :  { %1454 = shalt.err (!%p1451_p2)
}
   0x7   :  { %s1455_s21 = scalar_lea.vmem %s19_s13, 14976  ;;  %p1460_p4 = scmp.lt.s32.totalorder %s19_s13, %s19_s13 }
   0x8   :  { %p1456_p3 = scmp.ne.s32.totalorder %s19_s13, %s1455_s21  ;;  %p1461_p5 = scmp.lt.s32.totalorder %s1455_s21, %s1455_s21 }
   0xa   :  { %p1462_p6 = por %p1461_p5, %p1460_p4 }
   0xc   :  { %p1463_p7 = pnand %p1462_p6, %p1456_p3 }
   0xe   :  { %1466 = shalt.err (!%p1463_p7)
}
   0xf   :  { %s1470_s22 = smov 128   ;;  %s1471_s23 = smov 8  }
  0x10   :  { %24 = dma.hbm_to_vmem [thread:$0]  %s1571_s2, 14976, %s19_s13, [#allocation3], %s1470_s22, %s1470_s22, %s1471_s23  }
  0x11   :  { %1467 = dma.done.wait [#allocation3], 14976  }
  0x12   :  { %1468 = vsyncadd [#allocation3], 4294952320  ;;  %v46_v0 = vld [vmem:[#allocation2 + $0x80] sm:$0xff]  ;;  %v47_v1 = vld [vmem:[#allocation2 + $0x88] sm:$0xff]  ;;  %v1472_v47 = vmov 1983009808   ;;  %v137_v49 = vlaneseq }
  0x13   :  { %v78_v2 = vld [vmem:[#allocation2 + $0x180] sm:$0xff]  ;;  %v1292_v3 = vpack.c.bf16 %v47_v1, %v46_v0  ;;  %v79_v4 = vld [vmem:[#allocation2 + $0x188] sm:$0xff]  ;;  %v48_v11 = vld [vmem:[#allocation2 + $0x90] sm:$0xff]  ;;  %v135_v48 = vunpack.c.l.s4 %v1472_v47  ;;  %vm386_vm0 = vcmask 326656   ;;  %s1474_s5 = smov 96   ;;  %vm522_vm1 = vcmask 261120  }
  0x14   :  { %v30_v5 = vld [vmem:[#allocation2] sm:$0xff]  ;;  %v31_v6 = vld [vmem:[#allocation2 + $0x8] sm:$0xff]  ;;  %v1324_v7 = vpack.c.bf16 %v79_v4, %v78_v2  ;;  %v49_v13 = vld [vmem:[#allocation2 + $0x98] sm:$0xff]  ;;  %v1513_v0 = vshrl.u32 %v137_v49, 7  ;;  %vm604_vm2 = vcmask 64512   ;;  %vm1477_vm3 = vmmov 0  }
  0x15   :  { %v1294_v8 = vpack.c.bf16 %v31_v6, %v30_v5  ;;  %v62_v9 = vld [vmem:[#allocation2 + $0x100] sm:$0xff]  ;;  %v63_v10 = vld [vmem:[#allocation2 + $0x108] sm:$0xff]  ;;  %1293 = vmatprep.subr.bf16.mxu0 %v1292_v3  ;;  %v80_v14 = vld [vmem:[#allocation2 + $0x190] sm:$0xff]  ;;  %v1296_v16 = vpack.c.bf16 %v49_v13, %v48_v11  ;;  %v136_v63 = vunpack.c.0.s8 %v135_v48  ;;  %vm757_vm4 = vcmask 1041409   ;;  %s1479_s6 = smov 21  }
  0x16   :  { %v1326_v12 = vpack.c.bf16 %v63_v10, %v62_v9  ;;  %v81_v15 = vld [vmem:[#allocation2 + $0x198] sm:$0xff]  ;;  %1325 = vmatprep.subr.bf16.mxu1 %v1324_v7  ;;  %v32_v18 = vld [vmem:[#allocation2 + $0x10] sm:$0xff]  ;;  %v50_v23 = vld [vmem:[#allocation2 + $0xa0] sm:$0xff]  ;;  %vm832_vm5 = vcmask 254976   ;;  %vm958_vm6 = vcmask 130048   ;;  %vm1069_vm8 = vcmask 302080  }
  0x17   :  { %1295 = vmatpush3.bf16.msra.mxu0 %v1294_v8  ;;  %v1328_v17 = vpack.c.bf16 %v81_v15, %v80_v14  ;;  %v33_v19 = vld [vmem:[#allocation2 + $0x18] sm:$0xff]  ;;  %v64_v20 = vld [vmem:[#allocation2 + $0x110] sm:$0xff]  ;;  %v51_v24 = vld [vmem:[#allocation2 + $0xa8] sm:$0xff]  ;;  %v139_v13 = vsub.s32 %v136_v63, %v1513_v0  ;;  %vm1071_vm9 = vcmask 310272   ;;  %vm1073_vm10 = vcmask 318464  }
  0x18   :  { %1327 = vmatpush3.bf16.msra.mxu1 %v1326_v12  ;;  %v1298_v21 = vpack.c.bf16 %v33_v19, %v32_v18  ;;  %v65_v22 = vld [vmem:[#allocation2 + $0x118] sm:$0xff]  ;;  %1297 = vmatprep.subr.bf16.mxu0 %v1296_v16  ;;  %v1300_v26 = vpack.c.bf16 %v51_v24, %v50_v23  ;;  %v82_v27 = vld [vmem:[#allocation2 + $0x1a0] sm:$0xff]  ;;  %v83_v28 = vld [vmem:[#allocation2 + $0x1a8] sm:$0xff]  ;;  %vm1075_vm11 = vcmask 384000  }
  0x19   :  { %1329 = vmatprep.subr.bf16.mxu1 %v1328_v17  ;;  %v1330_v25 = vpack.c.bf16 %v65_v22, %v64_v20  ;;  %v34_v29 = vld [vmem:[#allocation2 + $0x20] sm:$0xff]  ;;  %v1332_v30 = vpack.c.bf16 %v83_v28, %v82_v27  ;;  %v35_v31 = vld [vmem:[#allocation2 + $0x28] sm:$0xff]  ;;  %v52_v35 = vld [vmem:[#allocation2 + $0xb0] sm:$0xff] }
  0x1a   :  { %v66_v32 = vld [vmem:[#allocation2 + $0x120] sm:$0xff]  ;;  %v67_v33 = vld [vmem:[#allocation2 + $0x128] sm:$0xff]  ;;  %v1302_v34 = vpack.c.bf16 %v35_v31, %v34_v29  ;;  %v53_v36 = vld [vmem:[#allocation2 + $0xb8] sm:$0xff] }
  0x1b   :  { %1299 = vmatpush3.bf16.msra.mxu0 %v1298_v21  ;;  %v84_v37 = vld [vmem:[#allocation2 + $0x1b0] sm:$0xff]  ;;  %v1334_v38 = vpack.c.bf16 %v67_v33, %v66_v32  ;;  %v1304_v39 = vpack.c.bf16 %v53_v36, %v52_v35  ;;  %v85_v40 = vld [vmem:[#allocation2 + $0x1b8] sm:$0xff]  ;;  %v54_v46 = vld [vmem:[#allocation2 + $0xc0] sm:$0xff] }
  0x1c   :  { %1331 = vmatpush3.bf16.msra.mxu1 %v1330_v25  ;;  %1301 = vmatprep.subr.bf16.mxu0 %v1300_v26  ;;  %v36_v41 = vld [vmem:[#allocation2 + $0x30] sm:$0xff]  ;;  %v37_v42 = vld [vmem:[#allocation2 + $0x38] sm:$0xff]  ;;  %v1336_v43 = vpack.c.bf16 %v85_v40, %v84_v37  ;;  %v55_v50 = vld [vmem:[#allocation2 + $0xc8] sm:$0xff] }
  0x1d   :  { %1333 = vmatprep.subr.bf16.mxu1 %v1332_v30  ;;  %v68_v44 = vld [vmem:[#allocation2 + $0x130] sm:$0xff]  ;;  %v69_v45 = vld [vmem:[#allocation2 + $0x138] sm:$0xff]  ;;  %v86_v51 = vld [vmem:[#allocation2 + $0x1c0] sm:$0xff]  ;;  %v1306_v53 = vpack.c.bf16 %v37_v42, %v36_v41  ;;  %v1308_v55 = vpack.c.bf16 %v55_v50, %v54_v46 }
  0x1e   :  { %v87_v52 = vld [vmem:[#allocation2 + $0x1c8] sm:$0xff]  ;;  %v1338_v54 = vpack.c.bf16 %v69_v45, %v68_v44  ;;  %v38_v56 = vld [vmem:[#allocation2 + $0x40] sm:$0xff]  ;;  %v56_v61 = vld [vmem:[#allocation2 + $0xd0] sm:$0xff] }
  0x1f   :  { %1303 = vmatpush3.bf16.msra.mxu0 %v1302_v34  ;;  %v39_v57 = vld [vmem:[#allocation2 + $0x48] sm:$0xff]  ;;  %v70_v58 = vld [vmem:[#allocation2 + $0x140] sm:$0xff]  ;;  %v1340_v59 = vpack.c.bf16 %v87_v52, %v86_v51  ;;  %v57_v62 = vld [vmem:[#allocation2 + $0xd8] sm:$0xff] }
  0x20   :  { %1335 = vmatpush3.bf16.msra.mxu1 %v1334_v38  ;;  %1305 = vmatprep.subr.bf16.mxu0 %v1304_v39  ;;  %v71_v60 = vld [vmem:[#allocation2 + $0x148] sm:$0xff]  ;;  %v88_v1 = vld [vmem:[#allocation2 + $0x1d0] sm:$0xff]  ;;  %v89_v2 = vld [vmem:[#allocation2 + $0x1d8] sm:$0xff]  ;;  %v1310_v3 = vpack.c.bf16 %v39_v57, %v38_v56  ;;  %v1312_v5 = vpack.c.bf16 %v57_v62, %v56_v61 }
  0x21   :  { %1337 = vmatprep.subr.bf16.mxu1 %v1336_v43  ;;  %v1342_v4 = vpack.c.bf16 %v71_v60, %v70_v58  ;;  %v40_v6 = vld [vmem:[#allocation2 + $0x50] sm:$0xff]  ;;  %v41_v7 = vld [vmem:[#allocation2 + $0x58] sm:$0xff]  ;;  %v1344_v9 = vpack.c.bf16 %v89_v2, %v88_v1  ;;  %v58_v11 = vld [vmem:[#allocation2 + $0xe0] sm:$0xff] }
  0x22   :  { %v72_v8 = vld [vmem:[#allocation2 + $0x150] sm:$0xff]  ;;  %v73_v10 = vld [vmem:[#allocation2 + $0x158] sm:$0xff]  ;;  %v59_v12 = vld [vmem:[#allocation2 + $0xe8] sm:$0xff]  ;;  %v1314_v16 = vpack.c.bf16 %v41_v7, %v40_v6 }
  0x23   :  { %1307 = vmatpush3.bf16.msra.mxu0 %v1306_v53  ;;  %v90_v14 = vld [vmem:[#allocation2 + $0x1e0] sm:$0xff]  ;;  %v91_v15 = vld [vmem:[#allocation2 + $0x1e8] sm:$0xff]  ;;  %v1346_v18 = vpack.c.bf16 %v73_v10, %v72_v8  ;;  %v1316_v19 = vpack.c.bf16 %v59_v12, %v58_v11  ;;  %v60_v25 = vld [vmem:[#allocation2 + $0xf0] sm:$0xff] }
  0x24   :  { %1339 = vmatpush3.bf16.msra.mxu1 %v1338_v54  ;;  %1309 = vmatprep.subr.bf16.mxu0 %v1308_v55  ;;  %v42_v17 = vld [vmem:[#allocation2 + $0x60] sm:$0xff]  ;;  %v43_v20 = vld [vmem:[#allocation2 + $0x68] sm:$0xff]  ;;  %v1348_v23 = vpack.c.bf16 %v91_v15, %v90_v14  ;;  %v61_v26 = vld [vmem:[#allocation2 + $0xf8] sm:$0xff] }
  0x25   :  { %1341 = vmatprep.subr.bf16.mxu1 %v1340_v59  ;;  %v74_v21 = vld [vmem:[#allocation2 + $0x160] sm:$0xff]  ;;  %v75_v24 = vld [vmem:[#allocation2 + $0x168] sm:$0xff]  ;;  %v92_v29 = vld [vmem:[#allocation2 + $0x1f0] sm:$0xff]  ;;  %v1318_v31 = vpack.c.bf16 %v43_v20, %v42_v17  ;;  %v1320_v35 = vpack.c.bf16 %v61_v26, %v60_v25 }
  0x26   :  { %v28_v22 = vld [vmem:[%s1569_s0] sm:$0xff]  ;;  %v93_v30 = vld [vmem:[#allocation2 + $0x1f8] sm:$0xff]  ;;  %v1350_v34 = vpack.c.bf16 %v75_v24, %v74_v21  ;;  %v44_v36 = vld [vmem:[#allocation2 + $0x70] sm:$0xff] }
  0x27   :  { %1311 = vmatpush3.bf16.msra.mxu0 %v1310_v3  ;;  %v140_v27 = vrot.slane %v28_v22, %v139_v13  ;;  %v133_v28 = vcombine.high %v28_v22, %v28_v22  ;;  %v45_v37 = vld [vmem:[#allocation2 + $0x78] sm:$0xff]  ;;  %v76_v38 = vld [vmem:[#allocation2 + $0x170] sm:$0xff]  ;;  %v1352_v39 = vpack.c.bf16 %v93_v30, %v92_v29  ;;  %v110_v42 = vld [vmem:[#allocation2 + $0x280] sm:$0xff] }
  0x28   :  { %1343 = vmatpush3.bf16.msra.mxu1 %v1342_v4  ;;  %1313 = vmatprep.subr.bf16.mxu0 %v1312_v5  ;;  %v77_v40 = vld [vmem:[#allocation2 + $0x178] sm:$0xff]  ;;  %v111_v43 = vld [vmem:[#allocation2 + $0x288] sm:$0xff]  ;;  %v376_v44 = vld [vmem:[#allocation2 + $0x300] sm:$0xff]  ;;  %v1322_v46 = vpack.c.bf16 %v45_v37, %v44_v36 }
  0x29   :  { %1345 = vmatprep.subr.bf16.mxu1 %v1344_v9  ;;  %v148_v32 = vcombine.high %v140_v27, %v140_v27  ;;  %v147_v33 = vrot.slane %v133_v28, %v139_v13  ;;  %v377_v45 = vld [vmem:[#allocation2 + $0x308] sm:$0xff]  ;;  %v1354_v47 = vpack.c.bf16 %v77_v40, %v76_v38  ;;  %v1356_v48 = vpack.c.bf16 %v111_v43, %v110_v42  ;;  %v94_v50 = vld [vmem:[#allocation2 + $0x200] sm:$0xff]  ;;  %v112_v53 = vld [vmem:[#allocation2 + $0x290] sm:$0xff] }
  0x2a   :  { %v95_v51 = vld [vmem:[#allocation2 + $0x208] sm:$0xff]  ;;  %v1388_v52 = vpack.c.bf16 %v377_v45, %v376_v44  ;;  %v113_v54 = vld [vmem:[#allocation2 + $0x298] sm:$0xff]  ;;  %v378_v55 = vld [vmem:[#allocation2 + $0x310] sm:$0xff] }
  0x2b   :  { %1315 = vmatpush3.bf16.msra.mxu0 %v1314_v16  ;;  %228 = vmatprep.mubr.f32.mxu0 %v148_v32  ;;  %v149_v41 = vcombine.high %v147_v33, %v147_v33  ;;  %v379_v56 = vld [vmem:[#allocation2 + $0x318] sm:$0xff]  ;;  %v1358_v57 = vpack.c.bf16 %v95_v51, %v94_v50  ;;  %v1360_v58 = vpack.c.bf16 %v113_v54, %v112_v53  ;;  %v96_v59 = vld [vmem:[#allocation2 + $0x210] sm:$0xff]  ;;  %v114_v62 = vld [vmem:[#allocation2 + $0x2a0] sm:$0xff] }
  0x2c   :  { %1347 = vmatpush3.bf16.msra.mxu1 %v1346_v18  ;;  %1317 = vmatprep.subr.bf16.mxu0 %v1316_v19  ;;  %v97_v60 = vld [vmem:[#allocation2 + $0x218] sm:$0xff]  ;;  %v1392_v61 = vpack.c.bf16 %v379_v56, %v378_v55  ;;  %v115_v63 = vld [vmem:[#allocation2 + $0x2a8] sm:$0xff]  ;;  %v374_v2 = vld [vmem:[%s1570_s1] sm:$0xff] }
  0x2d   :  { %1349 = vmatprep.subr.bf16.mxu1 %v1348_v23  ;;  %298 = vmatprep.mubr.f32.mxu1 %v149_v41  ;;  %v1522_v1 = vld.sshfl [vmem:[%s1569_s0 + $0x8] sm:$0x33 pattern:$0x76325410]  ;;  %v1362_v4 = vpack.c.bf16 %v97_v60, %v96_v59  ;;  %v1364_v5 = vpack.c.bf16 %v115_v63, %v114_v62  ;;  %v98_v6 = vld [vmem:[#allocation2 + $0x220] sm:$0xff]  ;;  %v116_v8 = vld [vmem:[#allocation2 + $0x2b0] sm:$0xff] }
  0x2e   :  { %v157_v3 = vcombine.high %v1522_v1, %v1522_v1  ;;  %v99_v7 = vld [vmem:[#allocation2 + $0x228] sm:$0xff]  ;;  %v117_v9 = vld [vmem:[#allocation2 + $0x2b8] sm:$0xff]  ;;  %v380_v10 = vld [vmem:[#allocation2 + $0x320] sm:$0xff]  ;;  %v1475_v63 = vmov 1966171168  }
  0x2f   :  { %1319 = vmatpush3.bf16.msra.mxu0 %v1318_v31  ;;  %v1366_v11 = vpack.c.bf16 %v99_v7, %v98_v6  ;;  %v1368_v12 = vpack.c.bf16 %v117_v9, %v116_v8  ;;  %v100_v13 = vld [vmem:[#allocation2 + $0x230] sm:$0xff]  ;;  %v101_v14 = vld [vmem:[#allocation2 + $0x238] sm:$0xff]  ;;  %v118_v15 = vld [vmem:[#allocation2 + $0x2c0] sm:$0xff]  ;;  %v498_v8 = vsub.s32 0, %v1513_v0 }
  0x30   :  { %1351 = vmatpush3.bf16.msra.mxu1 %v1350_v34  ;;  %1321 = vmatprep.subr.bf16.mxu0 %v1320_v35  ;;  %v119_v16 = vld [vmem:[#allocation2 + $0x2c8] sm:$0xff]  ;;  %v1370_v18 = vpack.c.bf16 %v101_v14, %v100_v13  ;;  %v102_v20 = vld [vmem:[#allocation2 + $0x240] sm:$0xff]  ;;  %v120_v22 = vld [vmem:[#allocation2 + $0x2d0] sm:$0xff] }
  0x31   :  { %1353 = vmatprep.subr.bf16.mxu1 %v1352_v39  ;;  %v375_v17 = vld [vmem:[%s1570_s1 + $0x8] sm:$0xff]  ;;  %v1372_v19 = vpack.c.bf16 %v119_v16, %v118_v15  ;;  %v121_v23 = vld [vmem:[#allocation2 + $0x2d8] sm:$0xff]  ;;  %v104_v26 = vld [vmem:[#allocation2 + $0x250] sm:$0xff]  ;;  %s1473_s1 = smov 32  }
  0x32   :  { %v103_v21 = vld [vmem:[#allocation2 + $0x248] sm:$0xff]  ;;  %v1376_v25 = vpack.c.bf16 %v121_v23, %v120_v22  ;;  %v122_v28 = vld [vmem:[#allocation2 + $0x2e0] sm:$0xff]  ;;  %v124_v34 = vld [vmem:[#allocation2 + $0x2f0] sm:$0xff] }
  0x33   :  { %1323 = vmatpush3.bf16.msra.mxu0 %v1322_v46  ;;  %v1374_v24 = vpack.c.bf16 %v103_v21, %v102_v20  ;;  %v123_v29 = vld [vmem:[#allocation2 + $0x2e8] sm:$0xff]  ;;  %v106_v32 = vld [vmem:[#allocation2 + $0x260] sm:$0xff]  ;;  %v125_v35 = vld [vmem:[#allocation2 + $0x2f8] sm:$0xff] }
  0x34   :  { %1355 = vmatpush3.bf16.msra.mxu1 %v1354_v47  ;;  %1357 = vmatprep.subr.bf16.mxu0 %v1356_v48  ;;  %v1380_v31 = vpack.c.bf16 %v123_v29, %v122_v28  ;;  %v1384_v37 = vpack.c.bf16 %v125_v35, %v124_v34  ;;  %v108_v38 = vld [vmem:[#allocation2 + $0x270] sm:$0xff]  ;;  %v109_v39 = vld [vmem:[#allocation2 + $0x278] sm:$0xff]  ;;  %v1083_v43 = vld [vmem:[#allocation2 + $0x3a0] ss:$0 sm:$0xff] }
  0x35   :  { %1389 = vmatprep.subr.bf16.mxu1 %v1388_v52  ;;  %v1386_v40 = vpack.c.bf16 %v109_v39, %v108_v38  ;;  %v1085_v51 = vld [vmem:[#allocation2 + $0x3a1] ss:$0 sm:$0xff]  ;;  %v469_v55 = vld [vmem:[#allocation2 + $0x388] sm:$0xff]  ;;  %v472_v20 = vld [vmem:[#allocation2 + $0x378] sm:$0xff] }
  0x36   :  { %229 = vmatmul.mubr.f32.vlgmr.msra.gmra.mrb[0].mxu0 %v140_v27  ;;  %v105_v27 = vld [vmem:[#allocation2 + $0x258] sm:$0xff]  ;;  %v468_v54 = vld [vmem:[#allocation2 + $0x380] sm:$0xff] }
  0x37   :  { %299 = vmatmul.mubr.f32.vlgmr.msra.gmra.mrb[0].mxu1 %v147_v33  ;;  %1359 = vmatpush3.bf16.msra.mxu0 %v1358_v57  ;;  %v1378_v30 = vpack.c.bf16 %v105_v27, %v104_v26  ;;  %v107_v33 = vld [vmem:[#allocation2 + $0x268] sm:$0xff]  ;;  %v1396_v57 = vpack.c.bf16 %v469_v55, %v468_v54 }
  0x38   :  { %1391 = vmatpush3.bf16.msra.mxu1 %v1388_v52  ;;  %1361 = vmatprep.subr.bf16.mxu0 %v1360_v58  ;;  %v1382_v36 = vpack.c.bf16 %v107_v33, %v106_v32 }
  0x39   :  { %1393 = vmatprep.subr.bf16.mxu1 %v1392_v61  ;;  %1244 = vmatprep.mubr.msk.f32.mxu1 %vm386_vm0, %v374_v2 }
  0x3a   :  { %368 = vmatprep.mubr.f32.mxu0 %v157_v3 }
  0x3b   :  { %1363 = vmatpush3.bf16.msra.mxu0 %v1362_v4  ;;  %v470_v4 = vld [vmem:[#allocation2 + $0x390] sm:$0xff] }
  0x3c   :  { %1395 = vmatpush3.bf16.msra.mxu1 %v1392_v61  ;;  %1365 = vmatprep.subr.bf16.mxu0 %v1364_v5  ;;  %v471_v5 = vld [vmem:[#allocation2 + $0x398] sm:$0xff] }
  0x3d   :  { %1242 = vmatprep.subr.mxu1 %v380_v10  ;;  %v1400_v6 = vpack.c.bf16 %v471_v5, %v470_v4  ;;  %v746_v4 = vld [vmem:[#allocation2 + $0x328] sm:$0xff]  ;;  %v747_v5 = vld [vmem:[#allocation2 + $0x330] sm:$0xff] }
  0x3f   :  { %1367 = vmatpush3.bf16.msra.mxu0 %v1366_v11 }
  0x40   :  { %1243 = vmatpush3.msra.mxu1 %v380_v10  ;;  %1369 = vmatprep.subr.bf16.mxu0 %v1368_v12 }
  0x41   :  { %1245 = vmatmul.mubr.msk.f32.vlgmr.msra.gmra.mrb[2].mxu1 %vm386_vm0, %v375_v17  ;;  %1397 = vmatprep.subr.bf16.mxu1 %v1396_v57 }
  0x42   :  { %1399 = vmatpush3.bf16.msra.mxu1 %v1396_v57 }
  0x43   :  { %1371 = vmatpush3.bf16.msra.mxu0 %v1370_v18  ;;  %1401 = vmatprep.subr.bf16.mxu1 %v1400_v6 }
  0x44   :  { %1373 = vmatprep.subr.bf16.mxu0 %v1372_v19 }
  0x46   :  { %1403 = vmatpush3.bf16.msra.mxu1 %v1400_v6  ;;  %v1405_v6 = vpack.c.bf16 %v747_v5, %v746_v4 }
  0x47   :  { %1375 = vmatpush3.bf16.msra.mxu0 %v1374_v24  ;;  %1258 = vmatprep.subr.mxu1 %v472_v20 }
  0x48   :  { %1377 = vmatprep.subr.bf16.mxu0 %v1376_v25 }
  0x4b   :  { %1379 = vmatpush3.bf16.msra.mxu0 %v1378_v30 }
  0x4c   :  { %1381 = vmatprep.subr.bf16.mxu0 %v1380_v31 }
  0x4f   :  { %1383 = vmatpush3.bf16.msra.mxu0 %v1382_v36 }
  0x50   :  { %1385 = vmatprep.subr.bf16.mxu0 %v1384_v37 }
  0x53   :  { %1387 = vmatpush3.bf16.msra.mxu0 %v1386_v40 }
  0x56   :  { %369 = vmatmul.mubr.f32.vlgmr.msra.gmra.mrb[2].mxu0 %v1522_v1  ;;  %v475_v1 = vunpack.c.l.s4 %v1475_v63 }
  0x58   :  { %v476_v2 = vunpack.c.0.s8 %v475_v1 }
  0x5a   :  { %v479_v3 = vsub.s32 %v476_v2, %v1513_v0 }
 0x109   :  { %v1132_v41 = vpop.f32.mrb[0].mxu0 }
 0x10a   :  { %v1167_v42 = vpop.f32.mrb[0].mxu1  ;;  %v1133_v44 = vpop.f32.mrb[1].mxu0 }
 0x10b   :  { %v1134_v45 = vadd.f32 %v1133_v44, %v1132_v41  ;;  %v1168_v46 = vpop.f32.mrb[1].mxu1 }
 0x10c   :  { %v1169_v47 = vadd.f32 %v1168_v46, %v1167_v42 }
 0x10d   :  { %v231_v48 = vadd.f32 %v1134_v45, %v1083_v43 }
 0x10f   :  { %v301_v50 = vadd.f32 %v1169_v47, %v231_v48 }
 0x114   :  { %v1246_v52 = vpop.f32.mrb[2].mxu1 }
 0x115   :  { %v459_v53 = vpop.f32.mrb[3].mxu1  ;;  %v465_v58 = vadd.f32 %v1246_v52, %v1085_v51 }
 0x116   :  { %v460_v56 = vadd.f32 %v1085_v51, %v459_v53 }
 0x118   :  { %508 = vrot.lane.b32.xlu0 %v460_v56, %s1473_s1 }
 0x11c   :  { %510 = vrot.lane.b32.xlu0 %v465_v58, %s1473_s1 }
 0x120   :  { %724 = vrot.lane.b32.xlu0 %v460_v56, %s1474_s5 }
 0x129   :  { %v1202_v59 = vpop.f32.mrb[2].mxu0 }
 0x12a   :  { %v1203_v60 = vpop.f32.mrb[3].mxu0 }
 0x12b   :  { %v1204_v61 = vadd.f32 %v1203_v60, %v1202_v59 }
 0x12d   :  { %v1537_v62 = vadd.f32 %v1204_v61, %v301_v50 }
 0x12f   :  { %v480_v7 = vrot.slane %v1537_v62, %v479_v3 }
 0x131   :  { %v488_v9 = vrot.slane %v480_v7, %v479_v3  ;;  %v481_v10 = vcombine.high %v480_v7, %v480_v7  ;;  %v1476_v7 = vmov 0.0|0.0  }
 0x132   :  { %1416 = vmatprep.subr.bf16.mxu0 %v1476_v7 }
 0x133   :  { %v499_v11 = vrot.slane %v488_v9, %v498_v8  ;;  %v495_v12 = vrot.slane %v481_v10, %v479_v3  ;;  %v749_v9 = vld [vmem:[#allocation2 + $0x340] sm:$0xff] }
 0x135   :  { %v503_v15 = vrot.slane %v495_v12, %v498_v8  ;;  %v748_v8 = vld [vmem:[#allocation2 + $0x338] sm:$0xff] }
 0x136   :  { %v1408_v10 = vpack.c.bf16 %v749_v9, %v748_v8 }
 0x18a   :  { %v509_v13 = vpop.permute.xlu0 %508 }
 0x18b   :  { %v514_v14 = vmul.f32 %v509_v13, %v499_v11  ;;  %v1478_v11 = vmov 0.0  }
 0x18c   :  { %1289 = vmatprep.mubr.msk.f32.mxu0 %vm1477_vm3, %v1478_v11 }
 0x18d   :  { %518 = vrot.lane.b32.xlu1 %v514_v14, %s1474_s5 }
 0x18e   :  { %v511_v16 = vpop.permute.xlu0 %510 }
 0x18f   :  { %v515_v17 = vmul.f32 %v511_v16, %v503_v15 }
 0x191   :  { %520 = vrot.lane.b32.xlu1 %v515_v17, %s1474_s5 }
 0x192   :  { %v725_v14 = vpop.permute.xlu0 %724 }
 0x195   :  { %726 = vrot.lane.b32.xlu1 %v465_v58, %s1474_s5 }
 0x1ff   :  { %v519_v18 = vpop.permute.xlu1 %518 }
 0x200   :  { %1255 = vmatprep.mubr.msk.f32.mxu1 %vm522_vm1, %v519_v18 }
 0x203   :  { %v521_v19 = vpop.permute.xlu1 %520 }
 0x204   :  { %1256 = vmatmul.mubr.msk.f32.vlgmr.msra.gmra.mrb[4].mxu1 %vm522_vm1, %v521_v19 }
 0x205   :  { %1259 = vmatpush3.msra.mxu1 %v472_v20 }
 0x206   :  { %1404 = vmatprep.subr.bf16.mxu1 %v1476_v7 }
 0x207   :  { %v727_v12 = vpop.permute.xlu1 %726 }
 0x2d7   :  { %v1257_v21 = vpop.f32.mrb[4].mxu1 }
 0x2d8   :  { %v603_v22 = vmul.f32 0.5, %v1257_v21  ;;  %v593_v23 = vpop.f32.mrb[5].mxu1 }
 0x2d9   :  { %v602_v24 = vmul.f32 0.5, %v593_v23 }
 0x2da   :  { %v612_v25 = vsel %vm604_vm2, %v603_v22, -inf }
 0x2db   :  { %v613_v26 = vrot.slane %v612_v25, 4  ;;  %v605_v27 = vsel %vm604_vm2, %v602_v24, -inf }
 0x2dc   :  { %v606_v28 = vrot.slane %v605_v27, 4 }
 0x2dd   :  { %v614_v29 = vmax.f32 %v612_v25, %v613_v26 }
 0x2de   :  { %v607_v30 = vmax.f32 %v605_v27, %v606_v28 }
 0x2df   :  { %v615_v31 = vrot.slane %v614_v29, 2 }
 0x2e0   :  { %v608_v32 = vrot.slane %v607_v30, 2 }
 0x2e1   :  { %v616_v33 = vmax.f32 %v614_v29, %v615_v31 }
 0x2e2   :  { %v609_v34 = vmax.f32 %v607_v30, %v608_v32 }
 0x2e3   :  { %v617_v35 = vrot.slane %v616_v33, 1 }
 0x2e4   :  { %v610_v36 = vrot.slane %v609_v34, 1 }
 0x2e5   :  { %v618_v37 = vmax.f32 %v616_v33, %v617_v35  ;;  %v1092_v33 = vld [vmem:[#allocation2 + $0x3a2] ss:$0 sm:$0xff] }
 0x2e6   :  { %v611_v38 = vmax.f32 %v609_v34, %v610_v36 }
 0x2e7   :  { %v620_v39 = vsub.f32 %v603_v22, %v618_v37 }
 0x2e8   :  { %v619_v40 = vsub.f32 %v602_v24, %v611_v38 }
 0x2e9   :  { %v623_v41 = vmul.f32 1.442695, %v620_v39 }
 0x2ea   :  { %v621_v42 = vmul.f32 1.442695, %v619_v40 }
 0x2eb   :  { %1431 = vpow2.f32 %v623_v41 }
 0x2ec   :  { %1433 = vpow2.f32 %v621_v42 }
 0x2f5   :  { %v1432_v43 = vpop.eup %1431 }
 0x2f6   :  { %v1434_v44 = vpop.eup %1433  ;;  %v632_v45 = vsel %vm604_vm2, %v1432_v43, 0.0 }
 0x2f7   :  { %v633_v46 = vrot.slane %v632_v45, 4  ;;  %v625_v47 = vsel %vm604_vm2, %v1434_v44, 0.0 }
 0x2f8   :  { %v626_v48 = vrot.slane %v625_v47, 4 }
 0x2f9   :  { %v634_v50 = vadd.f32 %v633_v46, %v632_v45  ;;  %v860_v45 = vld [vmem:[#allocation2 + $0x350] sm:$0xff] }
 0x2fa   :  { %v627_v51 = vadd.f32 %v626_v48, %v625_v47  ;;  %v861_v47 = vld [vmem:[#allocation2 + $0x358] sm:$0xff]  ;;  %v862_v48 = vld [vmem:[#allocation2 + $0x360] sm:$0xff] }
 0x2fb   :  { %v635_v52 = vrot.slane %v634_v50, 2 }
 0x2fc   :  { %v628_v53 = vrot.slane %v627_v51, 2 }
 0x2fd   :  { %v636_v54 = vadd.f32 %v635_v52, %v634_v50  ;;  %v1414_v50 = vpack.c.bf16 %v862_v48, %v861_v47 }
 0x2fe   :  { %v629_v55 = vadd.f32 %v628_v53, %v627_v51 }
 0x2ff   :  { %v637_v56 = vrot.slane %v636_v54, 1 }
 0x300   :  { %v630_v57 = vrot.slane %v629_v55, 1 }
 0x301   :  { %v638_v58 = vadd.f32 %v637_v56, %v636_v54  ;;  %v1094_v54 = vld [vmem:[#allocation2 + $0x3a3] ss:$0 sm:$0xff]  ;;  %v1095_v56 = vld [vmem:[#allocation2 + $0x3a4] ss:$0 sm:$0xff] }
 0x302   :  { %v631_v59 = vadd.f32 %v630_v57, %v629_v55 }
 0x303   :  { %1435 = vrcp.f32 %v638_v58 }
 0x304   :  { %1437 = vrcp.f32 %v631_v59  ;;  %v951_v59 = vld [vmem:[#allocation2 + $0x368] sm:$0xff] }
 0x30d   :  { %v1436_v60 = vpop.eup %1435 }
 0x30e   :  { %v1438_v61 = vpop.eup %1437  ;;  %v642_v63 = vmul.f32 %v1436_v60, %v1432_v43  ;;  %v952_v60 = vld [vmem:[#allocation2 + $0x370] sm:$0xff] }
 0x30f   :  { %v641_v1 = vmul.f32 %v1438_v61, %v1434_v44  ;;  %v859_v44 = vld [vmem:[#allocation2 + $0x348] sm:$0xff]  ;;  %v1417_v61 = vpack.c.bf16 %v952_v60, %v951_v59 }
 0x310   :  { %v1035_v2 = vsel %vm604_vm2, %v642_v63, 0.0  ;;  %v1411_v46 = vpack.c.bf16 %v860_v45, %v859_v44 }
 0x311   :  { %1260 = vmatprep.mubr.msk.f32.mxu1 %vm604_vm2, %v641_v1  ;;  %v1032_v3 = vsel %vm604_vm2, %v641_v1, 0.0  ;;  %1418 = vmatpush3.bf16.msra.mxu0 %v1417_v61 }
 0x312   :  { %1261 = vmatmul.mubr.msk.f32.vlgmr.msra.gmra.mrb[6].mxu1 %vm604_vm2, %v642_v63  ;;  %v1096_v63 = vld [vmem:[#allocation2 + $0x3a5] ss:$0 sm:$0xff] }
 0x313   :  { %1406 = vmatpush3.bf16.msra.mxu1 %v1405_v6  ;;  %1271 = vmatprep.mubr.msk.f32.mxu1 %vm1477_vm3, %v1478_v11 }
 0x314   :  { %1407 = vmatprep.subr.bf16.mxu1 %v1476_v7 }
 0x317   :  { %1409 = vmatpush3.bf16.msra.mxu1 %v1408_v10  ;;  %v1098_v10 = vld [vmem:[#allocation2 + $0x3a6] ss:$0 sm:$0xff] }
 0x318   :  { %1410 = vmatprep.subr.bf16.mxu1 %v1476_v7 }
 0x3e5   :  { %v1262_v13 = vpop.f32.mrb[6].mxu1 }
 0x3e6   :  { %v731_v15 = vmul.f32 %v1262_v13, %v727_v12  ;;  %v715_v16 = vpop.f32.mrb[7].mxu1 }
 0x3e7   :  { %v730_v17 = vmul.f32 %v725_v14, %v715_v16 }
 0x3e8   :  { %v739_v18 = vsel %vm522_vm1, %v731_v15, 0.0 }
 0x3e9   :  { %v740_v19 = vrot.slane %v739_v18, 4  ;;  %v732_v20 = vsel %vm522_vm1, %v730_v17, 0.0 }
 0x3ea   :  { %v733_v21 = vrot.slane %v732_v20, 4 }
 0x3eb   :  { %v741_v22 = vadd.f32 %v740_v19, %v739_v18  ;;  %v1056_v18 = vand.u32 127, %v137_v49 }
 0x3ec   :  { %v734_v23 = vadd.f32 %v733_v21, %v732_v20 }
 0x3ed   :  { %v742_v24 = vrot.slane %v741_v22, 2  ;;  %v1057_v20 = vadd.s32 4294967257, %v1056_v18 }
 0x3ee   :  { %v735_v25 = vrot.slane %v734_v23, 2 }
 0x3ef   :  { %v743_v26 = vadd.f32 %v742_v24, %v741_v22  ;;  %v1060_v22 = vsub.s32 %v1057_v20, %v1513_v0 }
 0x3f0   :  { %v736_v27 = vadd.f32 %v735_v25, %v734_v23 }
 0x3f1   :  { %v744_v28 = vrot.slane %v743_v26, 1 }
 0x3f2   :  { %v737_v29 = vrot.slane %v736_v27, 1 }
 0x3f3   :  { %v745_v30 = vadd.f32 %v744_v28, %v743_v26 }
 0x3f4   :  { %v738_v31 = vadd.f32 %v737_v29, %v736_v27 }
 0x3f6   :  { %v758_v32 = vsel %vm757_vm4, %v745_v30, %v738_v31 }
 0x3f7   :  { %1272 = vmatmul.mubr.msk.f32.vlgmr.msra.gmra.mrb[8].mxu1 %vm522_vm1, %v758_v32 }
 0x3f8   :  { %1282 = vmatprep.mubr.msk.f32.mxu1 %vm1477_vm3, %v1478_v11  ;;  %1412 = vmatpush3.bf16.msra.mxu1 %v1411_v46 }
 0x3f9   :  { %1413 = vmatprep.subr.bf16.mxu1 %v1476_v7 }
 0x3fc   :  { %1415 = vmatpush3.bf16.msra.mxu1 %v1414_v50 }
 0x4ca   :  { %v827_v34 = vpop.f32.mrb[8].mxu1 }
 0x4cb   :  { %v828_v35 = vadd.f32 %v1092_v33, %v827_v34  ;;  %v1273_v36 = vpop.f32.mrb[9].mxu1 }
 0x4cd   :  { %v831_v37 = vadd.f32 %v828_v35, %v1537_v62 }
 0x4cf   :  { %v833_v38 = vsel %vm832_vm5, %v831_v37, 0.0 }
 0x4d0   :  { %834 = vadd.xlane.f32.xlu0 %v833_v38 }
 0x4d4   :  { %1033 = vadd.xlane.f32.xlu0 %v1032_v3 }
 0x4d8   :  { %1036 = vadd.xlane.f32.xlu0 %v1035_v2 }
 0x55d   :  { %v835_v39 = vpop.xlane.xlu0 %834 }
 0x55e   :  { %v837_v40 = vmul.f32 0.03125, %v835_v39 }
 0x560   :  { %v838_v41 = vsub.f32 %v831_v37, %v837_v40 }
 0x561   :  { %v1034_v17 = vpop.xlane.xlu0 %1033 }
 0x562   :  { %v839_v42 = vmul.f32 %v838_v41, %v838_v41  ;;  %v1039_v23 = vmul.f32 0.125, %v1034_v17 }
 0x564   :  { %v840_v43 = vsel %vm832_vm5, %v839_v42, 0.0  ;;  %v1061_v27 = vrot.slane %v1039_v23, %v1060_v22 }
 0x565   :  { %841 = vadd.xlane.f32.xlu1 %v840_v43  ;;  %v1037_v19 = vpop.xlane.xlu0 %1036 }
 0x566   :  { %v1040_v21 = vmul.f32 0.125, %v1037_v19 }
 0x568   :  { %v1065_v25 = vrot.slane %v1040_v21, %v1060_v22 }
 0x56a   :  { %v1066_v49 = vsel %vm757_vm4, %v1065_v25, %v1061_v27 }
 0x5f2   :  { %v842_v62 = vpop.xlane.xlu1 %841 }
 0x5f3   :  { %v843_v51 = vmul.f32 0.03125, %v842_v62 }
 0x5f5   :  { %v844_v52 = vadd.f32 1e-05, %v843_v51 }
 0x5f7   :  { %1439 = vrsqrt.f32 %v844_v52 }
 0x601   :  { %v1440_v53 = vpop.eup %1439 }
 0x602   :  { %v846_v55 = vmul.f32 %v1440_v53, %v838_v41 }
 0x604   :  { %v852_v57 = vmul.f32 %v1094_v54, %v846_v55 }
 0x606   :  { %v858_v58 = vadd.f32 %v1095_v56, %v852_v57 }
 0x608   :  { %1283 = vmatmul.mubr.msk.f32.vlgmr.msra.gmra.mrb[10].mxu1 %vm522_vm1, %v858_v58 }
 0x6db   :  { %v937_v1 = vpop.f32.mrb[10].mxu1 }
 0x6dc   :  { %v938_v2 = vadd.f32 %v1096_v63, %v937_v1  ;;  %v1284_v3 = vpop.f32.mrb[11].mxu1 }
 0x6de   :  { %1046 = vrot.lane.b32.xlu0 %v938_v2, %s1479_s6  ;;  %v941_v4 = vmax.f32 %v938_v2, 0.0  ;;  %v943_v5 = vmin.f32 %v938_v2, 20.0  ;;  %vm942_vm7 = vcmp.gt.f32.partialorder %v938_v2, 20.0 }
 0x6e0   :  { %1290 = vmatmul.mubr.msk.f32.vlgmr.msra.gmra.mrb[4].mxu0 %vm958_vm6, %v941_v4  ;;  %v944_v6 = vmul.f32 1.442695, %v943_v5 }
 0x6e2   :  { %1441 = vpow2.f32 %v944_v6 }
 0x6ec   :  { %v1442_v7 = vpop.eup %1441 }
 0x6ed   :  { %v946_v8 = vadd.f32 1.0, %v1442_v7 }
 0x6ef   :  { %1443 = vlog2.f32 %v946_v8 }
 0x6f9   :  { %v1444_v9 = vpop.eup %1443 }
 0x6fa   :  { %v948_v11 = vmul.f32 0.6931472, %v1444_v9 }
 0x6fc   :  { %v949_v15 = vsel %vm942_vm7, %v938_v2, %v948_v11 }
 0x6fd   :  { %v950_v16 = vadd.f32 1e-06, %v949_v15 }
 0x750   :  { %v1047_v28 = vpop.permute.xlu0 %1046 }
 0x7b3   :  { %v1028_v12 = vpop.f32.mrb[4].mxu0 }
 0x7b4   :  { %v1029_v13 = vadd.f32 %v1098_v10, %v1028_v12  ;;  %v1291_v14 = vpop.f32.mrb[5].mxu0 }
 0x7b6   :  { %1042 = vrot.lane.b32.xlu1 %v1029_v13, %s1473_s1 }
 0x7ba   :  { %1050 = vrot.lane.b32.xlu1 %v950_v16, %s1479_s6 }
 0x828   :  { %v1043_v24 = vpop.permute.xlu1 %1042 }
 0x829   :  { %v1068_v26 = vsel %vm522_vm1, %v858_v58, %v1043_v24 }
 0x82a   :  { %v1070_v29 = vsel %vm1069_vm8, %v1068_v26, %v1047_v28 }
 0x82c   :  { %v1051_v30 = vpop.permute.xlu1 %1050 }
 0x82d   :  { %v1072_v31 = vsel %vm1071_vm9, %v1070_v29, %v1051_v30 }
 0x82e   :  { %v1074_v32 = vsel %vm1073_vm10, %v1072_v31, %v1066_v49 }
 0x82f   :  { %v1076_v33 = vsel %vm1075_vm11, %v1074_v32, 0.0 }
 0x830   :  { %1077 = vst [vmem:[%s1572_s3] sm:$0x3] %v1076_v33 }
 0x831   :  { %1082 = vsyncpa [#allocation3], 1 }

</bundles_post_ra>
